<compile_context>
chip_gen: v6e
topology: v6e:2x2x1
jax: 0.10.0
libtpu: 0.0.40
codegen_flags: <defaults>
</compile_context>

<pallas_src>
import jax
import jax.numpy as jnp
from jax.experimental import pallas as pl
from jax.experimental.pallas import tpu as pltpu


def _round_up(v, m):
    return ((v + m - 1) // m) * m


# ---------------------------------------------------------------------------
# Fused single-launch kernel: the whole padded problem resident in VMEM.
#   h    = x@Wl + bl
#   out1 = relu(A@(h@W1) + b1) + h
#   out2 = A@(out1@W2) + b2 + out1
# ---------------------------------------------------------------------------
def fused_kernel(x_ref, a_ref, wl_ref, bl_ref, w1_ref, b1_ref, w2_ref, b2_ref,
                 out1_ref, out2_ref):
    h = jnp.dot(x_ref[...], wl_ref[...],
                preferred_element_type=jnp.float32) + bl_ref[...]
    t1 = jnp.dot(h.astype(jnp.bfloat16), w1_ref[...],
                 preferred_element_type=jnp.float32)
    c1 = jnp.dot(a_ref[...], t1.astype(jnp.bfloat16),
                 preferred_element_type=jnp.float32) + b1_ref[...]
    out1 = jnp.maximum(c1, 0.0) + h            # relu BEFORE residual add
    out1_ref[...] = out1
    t2 = jnp.dot(out1.astype(jnp.bfloat16), w2_ref[...],
                 preferred_element_type=jnp.float32)
    out2_ref[...] = (jnp.dot(a_ref[...], t2.astype(jnp.bfloat16),
                             preferred_element_type=jnp.float32)
                     + b2_ref[...] + out1)


# ---------------------------------------------------------------------------
# Tiled pass 1: node-wise transform (big row tiles — grid-step-overhead bound)
#   h  = x @ Wl + bl   (f32, residual path)
#   t1 = h @ W1        (bf16, feeds conv1 aggregation)
# ---------------------------------------------------------------------------
def transform_kernel(x_ref, wl_ref, bl_ref, w1_ref, h_ref, t1_ref):
    h = jnp.dot(x_ref[...], wl_ref[...],
                preferred_element_type=jnp.float32) + bl_ref[...]
    h_ref[...] = h
    t1_ref[...] = jnp.dot(h.astype(jnp.bfloat16), w1_ref[...],
                          preferred_element_type=jnp.float32
                          ).astype(jnp.bfloat16)


# ---------------------------------------------------------------------------
# Tiled pass 2: conv1 aggregation + epilogue + next transform.
# A comes in as a full-row (TM, Np) slab and t1 is fully resident, so the
# aggregation is one long-K dot — no reduction grid axis, no acc scratch.
#   out1 = relu(A_slab @ t1 + b1) + h
#   t2   = out1 @ W2
# ---------------------------------------------------------------------------
def agg_conv1_kernel(a_ref, t1_ref, b1_ref, h_ref, w2_ref, out1_ref, t2_ref):
    agg = jnp.dot(a_ref[...], t1_ref[...], preferred_element_type=jnp.float32)
    out1 = jnp.maximum(agg + b1_ref[...], 0.0) + h_ref[...]
    out1_ref[...] = out1
    t2_ref[...] = jnp.dot(out1.astype(jnp.bfloat16), w2_ref[...],
                          preferred_element_type=jnp.float32
                          ).astype(jnp.bfloat16)


# ---------------------------------------------------------------------------
# Tiled pass 3: conv2 aggregation + residual.
#   out2 = A_slab @ t2 + b2 + out1
# ---------------------------------------------------------------------------
def agg_conv2_kernel(a_ref, t2_ref, b2_ref, out1_ref, out2_ref):
    out2_ref[...] = (jnp.dot(a_ref[...], t2_ref[...],
                             preferred_element_type=jnp.float32)
                     + b2_ref[...] + out1_ref[...])


# ---------------------------------------------------------------------------
# Glue: dense gcn_norm (PyG semantics, improved=True).
# add_remaining_self_loops: keep existing self-loop weight, else use fill.
# ---------------------------------------------------------------------------
def gcn_norm_dense(edge_index, num_nodes, improved=True):
    fill = 2.0 if improved else 1.0
    src = edge_index[0]
    dst = edge_index[1]
    A = jnp.zeros((num_nodes, num_nodes), jnp.float32)
    # message passing aggregates source -> target: A_norm[dst, src]
    A = A.at[dst, src].add(1.0)
    eye = jnp.eye(num_nodes, dtype=jnp.float32)
    diag = jnp.diagonal(A)
    new_diag = jnp.where(diag > 0.0, diag, fill)   # remaining self-loops only
    A = A * (1.0 - eye) + jnp.diag(new_diag)
    deg = A.sum(axis=1)
    dinv = jnp.where(deg > 0.0, jax.lax.rsqrt(deg), 0.0)
    return dinv[:, None] * A * dinv[None, :]


def gcn_encoder_forward(x, edge_index, params, force_path=None):
    """x: (N, Cin) f32, edge_index: (2, E) int32 -> [out1, out2] (N, Cout)."""
    N, Cin = x.shape
    Cout = params["bl"].shape[0]

    Cpin = _round_up(Cin, 128)          # lane-dense input features
    Cp = _round_up(Cout, 128)           # lane-dense output features
    vmem_limit = 48 * 1024 * 1024       # v7x-safe (< 64 MiB physical per TC)

    # ---- glue: norm (f32, unpadded N x N) + padded bf16 MXU weights --------
    a_f32 = gcn_norm_dense(edge_index, N, improved=True)
    wl_p = jnp.zeros((Cpin, Cp), jnp.bfloat16).at[:Cin, :Cout].set(
        params["Wl"].T.astype(jnp.bfloat16))
    w1_p = jnp.zeros((Cp, Cp), jnp.bfloat16).at[:Cout, :Cout].set(
        params["W1"].T.astype(jnp.bfloat16))
    w2_p = jnp.zeros((Cp, Cp), jnp.bfloat16).at[:Cout, :Cout].set(
        params["W2"].T.astype(jnp.bfloat16))
    bl_p = jnp.zeros((1, Cp), jnp.float32).at[0, :Cout].set(params["bl"])
    b1_p = jnp.zeros((1, Cp), jnp.float32).at[0, :Cout].set(params["b1"])
    b2_p = jnp.zeros((1, Cp), jnp.float32).at[0, :Cout].set(params["b2"])

    # ---- path selection ------------------------------------------------------
    # Fused: one launch, zero intermediate HBM traffic.  Used when the whole
    # padded problem (dominated by the Np^2 bf16 adjacency) fits comfortably
    # under the v7x VMEM budget; otherwise stream A per row tile (tiled path).
    Np_f = _round_up(N, 128)
    fused_bytes = (Np_f * Np_f * 2 + Np_f * Cpin * 2 + Cpin * Cp * 2
                   + 2 * Cp * Cp * 2 + 3 * Cp * 4
                   + 2 * Np_f * Cp * 4          # out1 / out2
                   + 4 * Np_f * Cp * 4)         # headroom for f32 temps
    if force_path is None:
        use_fused = fused_bytes <= 20 * 1024 * 1024
    else:
        use_fused = force_path == "fused"

    if use_fused:
        Np = Np_f
        a_p = jnp.zeros((Np, Np), jnp.bfloat16).at[:N, :N].set(
            a_f32.astype(jnp.bfloat16))
        x_p = jnp.zeros((Np, Cpin), jnp.bfloat16).at[:N, :Cin].set(
            x.astype(jnp.bfloat16))
        out1_p, out2_p = pl.pallas_call(
            fused_kernel,
            out_shape=(jax.ShapeDtypeStruct((Np, Cp), jnp.float32),
                       jax.ShapeDtypeStruct((Np, Cp), jnp.float32)),
            compiler_params=pltpu.CompilerParams(
                vmem_limit_bytes=vmem_limit),
            cost_estimate=pl.CostEstimate(
                flops=2 * Np * Cpin * Cp + 4 * Np * Cp * Cp + 4 * Np * Np * Cp,
                transcendentals=0,
                bytes_accessed=(Np * Np * 2 + Np * Cpin * 2 + Cpin * Cp * 2
                                + 2 * Cp * Cp * 2 + 2 * Np * Cp * 4)),
        )(x_p, a_p, wl_p, bl_p, w1_p, b1_p, w2_p, b2_p)
        return [out1_p[:N, :Cout], out2_p[:N, :Cout]]

    # ---- tiled path ----------------------------------------------------------
    TM = 128 if N <= 128 else 256
    Np = _round_up(N, TM)

    def agg_bytes(tm):
        return (2 * tm * Np * 2            # A row slab, double-buffered bf16
                + 2 * Np * Cp * 2          # resident t1/t2 (bf16)
                + 2 * tm * Cp * 4          # h / out1 residual tile
                + 2 * Cp * Cp * 2          # resident W2
                + 2 * tm * Cp * (4 + 2))   # out1 (f32) + t2 (bf16) out blocks

    if agg_bytes(TM) > 40 * 1024 * 1024 and TM > 128:
        TM = 128
        Np = _round_up(N, TM)
    # TODO(synk): for graphs where even a (128, Np) adjacency slab plus a
    # resident t block exceeds the VMEM budget (Np >> 32K), switch to a sparse
    # gather/scatter aggregation (PrefetchScalarGridSpec neighbor offsets)
    # instead of the dense A path used here.

    a_p = jnp.zeros((Np, Np), jnp.bfloat16).at[:N, :N].set(
        a_f32.astype(jnp.bfloat16))
    x_p = jnp.zeros((Np, Cpin), jnp.bfloat16).at[:N, :Cin].set(
        x.astype(jnp.bfloat16))

    cp_1d = pltpu.CompilerParams(
        dimension_semantics=("parallel",), vmem_limit_bytes=vmem_limit)

    # ---- pass 1: h = x@Wl + bl ;  t1 = h@W1 (large row tile) ----------------
    TM1 = next(t for t in (1024, 512, 256, 128) if Np % t == 0 and t <= Np)
    h_p, t1_p = pl.pallas_call(
        transform_kernel,
        out_shape=(jax.ShapeDtypeStruct((Np, Cp), jnp.float32),
                   jax.ShapeDtypeStruct((Np, Cp), jnp.bfloat16)),
        grid_spec=pltpu.PrefetchScalarGridSpec(
            num_scalar_prefetch=0,
            grid=(Np // TM1,),
            in_specs=[
                pl.BlockSpec((TM1, Cpin), lambda i: (i, 0)),   # x tile
                pl.BlockSpec((Cpin, Cp), lambda i: (0, 0)),    # Wl (resident)
                pl.BlockSpec((1, Cp), lambda i: (0, 0)),       # bl (resident)
                pl.BlockSpec((Cp, Cp), lambda i: (0, 0)),      # W1 (resident)
            ],
            out_specs=(pl.BlockSpec((TM1, Cp), lambda i: (i, 0)),
                       pl.BlockSpec((TM1, Cp), lambda i: (i, 0)))),
        compiler_params=cp_1d,
        cost_estimate=pl.CostEstimate(
            flops=2 * Np * Cpin * Cp + 2 * Np * Cp * Cp,
            transcendentals=0,
            bytes_accessed=(Np * Cpin * 2 + Cpin * Cp * 2 + Cp * Cp * 2
                            + Np * Cp * (4 + 2))),
    )(x_p, wl_p, bl_p, w1_p)

    # ---- pass 2: out1 = relu(A@t1 + b1) + h ;  t2 = out1@W2 -----------------
    # A streams as (TM, Np) full-row slabs; t1 / W2 / b1 stay resident.
    out1_p, t2_p = pl.pallas_call(
        agg_conv1_kernel,
        out_shape=(jax.ShapeDtypeStruct((Np, Cp), jnp.float32),
                   jax.ShapeDtypeStruct((Np, Cp), jnp.bfloat16)),
        grid_spec=pltpu.PrefetchScalarGridSpec(
            num_scalar_prefetch=0,
            grid=(Np // TM,),
            in_specs=[
                pl.BlockSpec((TM, Np), lambda i: (i, 0)),   # A row slab
                pl.BlockSpec((Np, Cp), lambda i: (0, 0)),   # t1 (resident)
                pl.BlockSpec((1, Cp), lambda i: (0, 0)),    # b1 (resident)
                pl.BlockSpec((TM, Cp), lambda i: (i, 0)),   # h residual tile
                pl.BlockSpec((Cp, Cp), lambda i: (0, 0)),   # W2 (resident)
            ],
            out_specs=(pl.BlockSpec((TM, Cp), lambda i: (i, 0)),
                       pl.BlockSpec((TM, Cp), lambda i: (i, 0)))),
        compiler_params=cp_1d,
        cost_estimate=pl.CostEstimate(
            flops=2 * Np * Np * Cp + 2 * Np * Cp * Cp,
            transcendentals=0,
            bytes_accessed=(Np * Np * 2 + Np * Cp * (2 + 4 + 4 + 2)
                            + Cp * Cp * 2)),
    )(a_p, t1_p, b1_p, h_p, w2_p)

    # ---- pass 3: out2 = A@t2 + b2 + out1 ------------------------------------
    out2_p = pl.pallas_call(
        agg_conv2_kernel,
        out_shape=jax.ShapeDtypeStruct((Np, Cp), jnp.float32),
        grid_spec=pltpu.PrefetchScalarGridSpec(
            num_scalar_prefetch=0,
            grid=(Np // TM,),
            in_specs=[
                pl.BlockSpec((TM, Np), lambda i: (i, 0)),   # A row slab
                pl.BlockSpec((Np, Cp), lambda i: (0, 0)),   # t2 (resident)
                pl.BlockSpec((1, Cp), lambda i: (0, 0)),    # b2 (resident)
                pl.BlockSpec((TM, Cp), lambda i: (i, 0)),   # out1 residual
            ],
            out_specs=pl.BlockSpec((TM, Cp), lambda i: (i, 0))),
        compiler_params=cp_1d,
        cost_estimate=pl.CostEstimate(
            flops=2 * Np * Np * Cp,
            transcendentals=0,
            bytes_accessed=Np * Np * 2 + Np * Cp * (2 + 4 + 4)),
    )(a_p, t2_p, b2_p, out1_p)

    # Note: padded rows of out1/t2 hold relu(b1)+bias-derived values; A's
    # padded columns are zero so real rows are unaffected, and the slice below
    # removes the padded rows/features entirely.
    return [out1_p[:N, :Cout], out2_p[:N, :Cout]]


def init_params(key, in_channels, out_channels):
    ks = jax.random.split(key, 6)
    s_lin = 1.0 / jnp.sqrt(in_channels)
    s_conv = 1.0 / jnp.sqrt(out_channels)
    return {
        "Wl": jax.random.uniform(ks[0], (out_channels, in_channels),
                                 jnp.float32, -s_lin, s_lin),
        "bl": jax.random.uniform(ks[1], (out_channels,), jnp.float32,
                                 -s_lin, s_lin),
        "W1": jax.random.uniform(ks[2], (out_channels, out_channels),
                                 jnp.float32, -s_conv, s_conv),
        "b1": jnp.zeros((out_channels,), jnp.float32),
        "W2": jax.random.uniform(ks[3], (out_channels, out_channels),
                                 jnp.float32, -s_conv, s_conv),
        "b2": jnp.zeros((out_channels,), jnp.float32),
    }


if __name__ == "__main__":
    key = jax.random.PRNGKey(0)
    k_x1, k_p1, k_x2, k_p2 = jax.random.split(key, 4)

    forward = jax.jit(gcn_encoder_forward, static_argnames=("force_path",))

    def reference(x, edge_index, params):
        a = gcn_norm_dense(edge_index, x.shape[0], improved=True)
        h = x @ params["Wl"].T + params["bl"]
        r1 = jnp.maximum(a @ (h @ params["W1"].T) + params["b1"], 0.0) + h
        r2 = (a @ (r1 @ params["W2"].T) + params["b2"]) + r1
        return r1, r2

    # ---- test 1: small demo graph -> fused single-launch path ---------------
    N1, Cin1, Cout1 = 8, 16, 32
    x1 = jax.random.normal(k_x1, (N1, Cin1), jnp.float32)
    src = jnp.arange(N1, dtype=jnp.int32)
    dst = (src + 1) % N1
    ei1 = jnp.stack([jnp.concatenate([src, dst]),
                     jnp.concatenate([dst, src])], axis=0)
    p1 = init_params(k_p1, Cin1, Cout1)

    out1_a, out2_a = forward(x1, ei1, p1)
    jax.block_until_ready((out1_a, out2_a))
    r1_a, r2_a = reference(x1, ei1, p1)
    assert out1_a.shape == (N1, Cout1) and out2_a.shape == (N1, Cout1)
    # bf16 MXU operands with f32 accumulation -> loosened tolerance.
    assert jnp.allclose(out1_a, r1_a, atol=5e-2, rtol=5e-2)
    assert jnp.allclose(out2_a, r2_a, atol=5e-2, rtol=5e-2)

    # ---- test 2: bigger graph, force the tiled multi-row-tile path ----------
    N2, Cin2, Cout2 = 300, 48, 64
    x2 = jax.random.normal(k_x2, (N2, Cin2), jnp.float32)
    s2 = jnp.arange(N2, dtype=jnp.int32)
    ring = (s2 + 1) % N2
    skip = (s2 + 7) % N2
    ei2 = jnp.stack([jnp.concatenate([s2, ring, s2, skip]),
                     jnp.concatenate([ring, s2, skip, s2])], axis=0)
    p2 = init_params(k_p2, Cin2, Cout2)

    out1_b, out2_b = forward(x2, ei2, p2, force_path="tiled")
    jax.block_until_ready((out1_b, out2_b))
    r1_b, r2_b = reference(x2, ei2, p2)
    assert out1_b.shape == (N2, Cout2) and out2_b.shape == (N2, Cout2)
    # deeper bf16 chain (two aggregations over a larger graph) -> 8e-2.
    assert jnp.allclose(out1_b, r1_b, atol=8e-2, rtol=8e-2)
    assert jnp.allclose(out2_b, r2_b, atol=8e-2, rtol=8e-2)

    print("KERNEL_OK")
</pallas_src>

<mosaic_0001>
module attributes {stable_mosaic.version = 11 : i64} {
  func.func private @main(%arg0: i32) attributes {dimension_semantics = [#tpu.dimension_semantics<core_parallel>], iteration_bounds = array<i64: 2>, tpu.core_type = #tpu.core_type<sc_scalar_subcore>, window_params = []} {
    return
  }
}

module attributes {stable_mosaic.version = 11 : i64} {
  func.func private @main(%arg0: i32) attributes {dimension_semantics = [#tpu.dimension_semantics<core_parallel>], iteration_bounds = array<i64: 2>, tpu.core_type = #tpu.core_type<sc_scalar_subcore>, window_params = []} {
    return
  }
}

module attributes {stable_mosaic.version = 11 : i64} {
  func.func @fused_kernel(%arg0: memref<128x128xbf16, #tpu.memory_space<vmem>>, %arg1: memref<128x128xbf16, #tpu.memory_space<vmem>>, %arg2: memref<128x128xbf16, #tpu.memory_space<vmem>>, %arg3: memref<1x128xf32, #tpu.memory_space<vmem>>, %arg4: memref<128x128xbf16, #tpu.memory_space<vmem>>, %arg5: memref<1x128xf32, #tpu.memory_space<vmem>>, %arg6: memref<128x128xbf16, #tpu.memory_space<vmem>>, %arg7: memref<1x128xf32, #tpu.memory_space<vmem>>, %arg8: memref<128x128xf32, #tpu.memory_space<vmem>>, %arg9: memref<128x128xf32, #tpu.memory_space<vmem>>) attributes {dimension_semantics = [], scalar_prefetch = 0 : i64, scratch_operands = 0 : i64, tpu.core_type = #tpu.core_type<tc>} {
    %c0 = arith.constant 0 : index
    %c0_0 = arith.constant 0 : index
    %0 = vector.load %arg0[%c0, %c0_0] : memref<128x128xbf16, #tpu.memory_space<vmem>>, vector<128x128xbf16>
    %c0_1 = arith.constant 0 : index
    %c0_2 = arith.constant 0 : index
    %1 = vector.load %arg2[%c0_1, %c0_2] : memref<128x128xbf16, #tpu.memory_space<vmem>>, vector<128x128xbf16>
    %cst = arith.constant dense<0.000000e+00> : vector<128x128xf32>
    %2 = tpu.matmul %0, %1, %cst {dimension_numbers = #tpu.dot_dimension_numbers<[1], [0], [0], [1], [0, 0, 1, 1], [], []>} : vector<128x128xbf16>, vector<128x128xbf16>, vector<128x128xf32> -> vector<128x128xf32>
    %c0_3 = arith.constant 0 : index
    %c0_4 = arith.constant 0 : index
    %3 = vector.load %arg3[%c0_3, %c0_4] : memref<1x128xf32, #tpu.memory_space<vmem>>, vector<1x128xf32>
    %4 = vector.broadcast %3 : vector<1x128xf32> to vector<128x128xf32>
    %5 = arith.addf %2, %4 : vector<128x128xf32>
    %6 = arith.truncf %5 : vector<128x128xf32> to vector<128x128xbf16>
    %c0_5 = arith.constant 0 : index
    %c0_6 = arith.constant 0 : index
    %7 = vector.load %arg4[%c0_5, %c0_6] : memref<128x128xbf16, #tpu.memory_space<vmem>>, vector<128x128xbf16>
    %cst_7 = arith.constant dense<0.000000e+00> : vector<128x128xf32>
    %8 = tpu.matmul %6, %7, %cst_7 {dimension_numbers = #tpu.dot_dimension_numbers<[1], [0], [0], [1], [0, 0, 1, 1], [], []>} : vector<128x128xbf16>, vector<128x128xbf16>, vector<128x128xf32> -> vector<128x128xf32>
    %c0_8 = arith.constant 0 : index
    %c0_9 = arith.constant 0 : index
    %9 = vector.load %arg1[%c0_8, %c0_9] : memref<128x128xbf16, #tpu.memory_space<vmem>>, vector<128x128xbf16>
    %10 = arith.truncf %8 : vector<128x128xf32> to vector<128x128xbf16>
    %cst_10 = arith.constant dense<0.000000e+00> : vector<128x128xf32>
    %11 = tpu.matmul %9, %10, %cst_10 {dimension_numbers = #tpu.dot_dimension_numbers<[1], [0], [0], [1], [0, 0, 1, 1], [], []>} : vector<128x128xbf16>, vector<128x128xbf16>, vector<128x128xf32> -> vector<128x128xf32>
    %c0_11 = arith.constant 0 : index
    %c0_12 = arith.constant 0 : index
    %12 = vector.load %arg5[%c0_11, %c0_12] : memref<1x128xf32, #tpu.memory_space<vmem>>, vector<1x128xf32>
    %13 = vector.broadcast %12 : vector<1x128xf32> to vector<128x128xf32>
    %14 = arith.addf %11, %13 : vector<128x128xf32>
    %cst_13 = arith.constant 0.000000e+00 : f32
    %15 = vector.broadcast %cst_13 : f32 to vector<128x128xf32>
    %16 = arith.maximumf %14, %15 : vector<128x128xf32>
    %17 = arith.addf %16, %5 : vector<128x128xf32>
    %c0_14 = arith.constant 0 : index
    %c0_15 = arith.constant 0 : index
    %18 = vector.load %arg8[%c0_14, %c0_15] : memref<128x128xf32, #tpu.memory_space<vmem>>, vector<128x128xf32>
    tpu.vector_store %arg8[%c0_14, %c0_15], %17 {strides = array<i32>} : memref<128x128xf32, #tpu.memory_space<vmem>>, vector<128x128xf32>,
    %19 = arith.truncf %17 : vector<128x128xf32> to vector<128x128xbf16>
    %c0_16 = arith.constant 0 : index
    %c0_17 = arith.constant 0 : index
    %20 = vector.load %arg6[%c0_16, %c0_17] : memref<128x128xbf16, #tpu.memory_space<vmem>>, vector<128x128xbf16>
    %cst_18 = arith.constant dense<0.000000e+00> : vector<128x128xf32>
    %21 = tpu.matmul %19, %20, %cst_18 {dimension_numbers = #tpu.dot_dimension_numbers<[1], [0], [0], [1], [0, 0, 1, 1], [], []>} : vector<128x128xbf16>, vector<128x128xbf16>, vector<128x128xf32> -> vector<128x128xf32>
    %c0_19 = arith.constant 0 : index
    %c0_20 = arith.constant 0 : index
    %22 = vector.load %arg1[%c0_19, %c0_20] : memref<128x128xbf16, #tpu.memory_space<vmem>>, vector<128x128xbf16>
    %23 = arith.truncf %21 : vector<128x128xf32> to vector<128x128xbf16>
    %cst_21 = arith.constant dense<0.000000e+00> : vector<128x128xf32>
    %24 = tpu.matmul %22, %23, %cst_21 {dimension_numbers = #tpu.dot_dimension_numbers<[1], [0], [0], [1], [0, 0, 1, 1], [], []>} : vector<128x128xbf16>, vector<128x128xbf16>, vector<128x128xf32> -> vector<128x128xf32>
    %c0_22 = arith.constant 0 : index
    %c0_23 = arith.constant 0 : index
    %25 = vector.load %arg7[%c0_22, %c0_23] : memref<1x128xf32, #tpu.memory_space<vmem>>, vector<1x128xf32>
    %26 = vector.broadcast %25 : vector<1x128xf32> to vector<128x128xf32>
    %27 = arith.addf %24, %26 : vector<128x128xf32>
    %28 = arith.addf %27, %17 : vector<128x128xf32>
    %c0_24 = arith.constant 0 : index
    %c0_25 = arith.constant 0 : index
    %29 = vector.load %arg9[%c0_24, %c0_25] : memref<128x128xf32, #tpu.memory_space<vmem>>, vector<128x128xf32>
    tpu.vector_store %arg9[%c0_24, %c0_25], %28 {strides = array<i32>} : memref<128x128xf32, #tpu.memory_space<vmem>>, vector<128x128xf32>,
    return
  }
}

</mosaic_0001>

<bundles_post_ra>
// kernel: gcn_encoder_forward.1
= control target key start
LH: loop header
LB: loop body
LE: loop exit
PB: predicated region body
PF: predicated region fallthrough
CT: control target
= control target key end

     0   :  { %s1858_s2 = inlined_call_operand.vmem [shape: bf16[128,128], index: 2, kind: input, shape index: {}]   ;;  %s1859_s0 = inlined_call_operand.vmem [shape: bf16[128,128], index: 0, kind: input, shape index: {}]   ;;  %s1860_s4 = inlined_call_operand.vmem [shape: bf16[128,128], index: 4, kind: input, shape index: {}]   ;;  %s1861_s3 = inlined_call_operand.vmem [shape: f32[1,128], index: 3, kind: input, shape index: {}]   ;;  %s1862_s1 = inlined_call_operand.vmem [shape: bf16[128,128], index: 1, kind: input, shape index: {}]   ;;  %s1863_s6 = inlined_call_operand.vmem [shape: bf16[128,128], index: 6, kind: input, shape index: {}]   ;;  %s1864_s5 = inlined_call_operand.vmem [shape: f32[1,128], index: 5, kind: input, shape index: {}]   ;;  %s1865_s8 = inlined_call_operand.vmem [shape: f32[128,128], index: 8, kind: output, shape index: {0}]   ;;  %s1866_s7 = inlined_call_operand.vmem [shape: f32[1,128], index: 7, kind: input, shape index: {}]   ;;  %s1867_s9 = inlined_call_operand.vmem [shape: f32[128,128], index: 9, kind: output, shape index: {1}]  }
   0x1   :  { %v1349_v0 = vld [vmem:[%s1858_s2 + $0x38] sm:$0xff]   ;;  %v1350_v1 = vld [vmem:[%s1858_s2 + $0x30] sm:$0xff]   ;;  %v1351_v2 = vld [vmem:[%s1858_s2 + $0x28] sm:$0xff]  }
   0x2   :  { %1173 = vmatprep.subr.bf16.mxu0 %v1349_v0  ;;  %v1352_v3 = vld [vmem:[%s1858_s2 + $0x20] sm:$0xff]   ;;  %v1353_v5 = vld [vmem:[%s1858_s2 + $0x18] sm:$0xff]   ;;  %v1354_v6 = vld [vmem:[%s1858_s2 + $0x10] sm:$0xff]  }
   0x3   :  { %1174 = vmatpush3.bf16.msra.mxu0 %v1349_v0  ;;  %v1357_v4 = vld [vmem:[%s1859_s0] sm:$0xff]   ;;  %v1365_v7 = vld [vmem:[%s1860_s4 + $0x38] sm:$0xff]   ;;  %v1366_v8 = vld [vmem:[%s1860_s4 + $0x30] sm:$0xff]  }
   0x4   :  { %1175 = vmatprep.subr.bf16.mxu0 %v1350_v1  ;;  %1189 = vmatprep.mubr.bf16.mxu0 %v1357_v4  ;;  %v1355_v9 = vld [vmem:[%s1858_s2 + $0x8] sm:$0xff]   ;;  %v1356_v11 = vld [vmem:[%s1858_s2] sm:$0xff]   ;;  %v1369_v13 = vld [vmem:[%s1860_s4 + $0x18] sm:$0xff]  }
   0x5   :  { %1205 = vmatprep.subr.bf16.mxu1 %v1365_v7  ;;  %v1367_v10 = vld [vmem:[%s1860_s4 + $0x28] sm:$0xff]   ;;  %v1368_v12 = vld [vmem:[%s1860_s4 + $0x20] sm:$0xff]   ;;  %v1359_v15 = vld [vmem:[%s1859_s0 + $0x10] sm:$0xff]  }
   0x6   :  { %1206 = vmatpush3.bf16.msra.mxu1 %v1365_v7  ;;  %v1358_v14 = vld [vmem:[%s1859_s0 + $0x8] sm:$0xff]   ;;  %v1360_v16 = vld [vmem:[%s1859_s0 + $0x18] sm:$0xff]   ;;  %v1361_v17 = vld [vmem:[%s1859_s0 + $0x20] sm:$0xff]  }
   0x7   :  { %1176 = vmatpush3.bf16.msra.mxu0 %v1350_v1  ;;  %1207 = vmatprep.subr.bf16.mxu1 %v1366_v8  ;;  %v1362_v18 = vld [vmem:[%s1859_s0 + $0x28] sm:$0xff]   ;;  %v1363_v19 = vld [vmem:[%s1859_s0 + $0x30] sm:$0xff]   ;;  %v1364_v20 = vld [vmem:[%s1859_s0 + $0x38] sm:$0xff]  }
   0x8   :  { %1177 = vmatprep.subr.bf16.mxu0 %v1351_v2  ;;  %v1370_v21 = vld [vmem:[%s1860_s4 + $0x10] sm:$0xff]   ;;  %v1371_v22 = vld [vmem:[%s1860_s4 + $0x8] sm:$0xff]   ;;  %v1372_v23 = vld [vmem:[%s1860_s4] sm:$0xff]  }
   0x9   :  { %v1042_v27 = vld [vmem:[%s1861_s3] ss:$0 sm:$0xff]  ;;  %v1383_v4 = vld [vmem:[%s1863_s6 + $0x28] sm:$0xff]  }
   0xa   :  { %1208 = vmatpush3.bf16.msra.mxu1 %v1366_v8  ;;  %v1373_v1 = vld [vmem:[%s1862_s1] sm:$0xff]  }
   0xb   :  { %1178 = vmatpush3.bf16.msra.mxu0 %v1351_v2  ;;  %1209 = vmatprep.subr.bf16.mxu1 %v1367_v10  ;;  %v1381_v2 = vld [vmem:[%s1863_s6 + $0x38] sm:$0xff]  }
   0xc   :  { %1179 = vmatprep.subr.bf16.mxu0 %v1352_v3 }
   0xe   :  { %1210 = vmatpush3.bf16.msra.mxu1 %v1367_v10 }
   0xf   :  { %1180 = vmatpush3.bf16.msra.mxu0 %v1352_v3  ;;  %1211 = vmatprep.subr.bf16.mxu1 %v1368_v12  ;;  %v1382_v3 = vld [vmem:[%s1863_s6 + $0x30] sm:$0xff]  }
  0x10   :  { %1181 = vmatprep.subr.bf16.mxu0 %v1353_v5 }
  0x12   :  { %1212 = vmatpush3.bf16.msra.mxu1 %v1368_v12 }
  0x13   :  { %1182 = vmatpush3.bf16.msra.mxu0 %v1353_v5  ;;  %1213 = vmatprep.subr.bf16.mxu1 %v1369_v13  ;;  %v1384_v5 = vld [vmem:[%s1863_s6 + $0x20] sm:$0xff]  }
  0x14   :  { %1183 = vmatprep.subr.bf16.mxu0 %v1354_v6 }
  0x16   :  { %1214 = vmatpush3.bf16.msra.mxu1 %v1369_v13 }
  0x17   :  { %1184 = vmatpush3.bf16.msra.mxu0 %v1354_v6  ;;  %1215 = vmatprep.subr.bf16.mxu1 %v1370_v21 }
  0x18   :  { %1185 = vmatprep.subr.bf16.mxu0 %v1355_v9 }
  0x1a   :  { %1216 = vmatpush3.bf16.msra.mxu1 %v1370_v21 }
  0x1b   :  { %1186 = vmatpush3.bf16.msra.mxu0 %v1355_v9  ;;  %1217 = vmatprep.subr.bf16.mxu1 %v1371_v22 }
  0x1c   :  { %1187 = vmatprep.subr.bf16.mxu0 %v1356_v11 }
  0x1e   :  { %1218 = vmatpush3.bf16.msra.mxu1 %v1371_v22 }
  0x1f   :  { %1188 = vmatpush3.bf16.msra.mxu0 %v1356_v11  ;;  %1219 = vmatprep.subr.bf16.mxu1 %v1372_v23 }
  0x22   :  { %1190 = vmatmul.mubr.bf16.vlgmr.msra.gmra.mxu0 %v1358_v14  ;;  %1220 = vmatpush3.bf16.msra.mxu1 %v1372_v23 }
  0x23   :  { %1193 = vmatprep.mubr.bf16.mxu0 %v1359_v15  ;;  %1269 = vmatprep.subr.bf16.mxu1 %v1381_v2 }
  0x2a   :  { %1194 = vmatmul.mubr.bf16.gmra.mxu0 %v1360_v16 }
  0x2b   :  { %1197 = vmatprep.mubr.bf16.mxu0 %v1361_v17 }
  0x32   :  { %1198 = vmatmul.mubr.bf16.gmra.mxu0 %v1362_v18 }
  0x33   :  { %1201 = vmatprep.mubr.bf16.mxu0 %v1363_v19 }
  0x3a   :  { %1202 = vmatmul.mubr.bf16.gmra.mxu0 %v1364_v20 }
  0x3b   :  { %1253 = vmatprep.mubr.bf16.mxu0 %v1373_v1 }
  0xe2   :  { %v1191_v24 = vpop.f32.mrf.mxu0 }
  0xe3   :  { %v1528_v32 = vadd.f32 %v1191_v24, %v1042_v27 }
  0xe4   :  { %v201_v25 = vpop.f32.mrf.mxu0 }
  0xe5   :  { %v1524_v30 = vadd.f32 %v1042_v27, %v201_v25 }
  0xe6   :  { %v1192_v26 = vpop.f32.mrf.mxu0 }
  0xe7   :  { %v1522_v28 = vadd.f32 %v1192_v26, %v1042_v27 }
  0xe8   :  { %v204_v29 = vpop.f32.mrf.mxu0 }
  0xe9   :  { %v1526_v31 = vadd.f32 %v1042_v27, %v204_v29  ;;  %v265_v35 = vpack.c.bf16 %v1522_v28, %v1528_v32 }
  0xea   :  { %v1195_v33 = vpop.f32.mrf.mxu0 }
  0xeb   :  { %v264_v34 = vpack.c.bf16 %v1526_v31, %v1524_v30  ;;  %v1540_v42 = vadd.f32 %v1195_v33, %v1042_v27 }
  0xec   :  { %v217_v36 = vpop.f32.mrf.mxu0 }
  0xed   :  { %1221 = vmatprep.mubr.bf16.mxu1 %v264_v34  ;;  %v1536_v40 = vadd.f32 %v1042_v27, %v217_v36  ;;  %v1374_v34 = vld [vmem:[%s1862_s1 + $0x8] sm:$0xff]   ;;  %v1376_v36 = vld [vmem:[%s1862_s1 + $0x18] sm:$0xff]  }
  0xee   :  { %v1196_v37 = vpop.f32.mrf.mxu0  ;;  %1222 = vmatmul.mubr.bf16.vlgmr.msra.gmra.mxu1 %v265_v35  ;;  %v1375_v35 = vld [vmem:[%s1862_s1 + $0x10] sm:$0xff]  }
  0xef   :  { %v1534_v38 = vadd.f32 %v1196_v37, %v1042_v27  ;;  %1270 = vmatpush3.bf16.msra.mxu1 %v1381_v2  ;;  %v1377_v37 = vld [vmem:[%s1862_s1 + $0x20] sm:$0xff]  }
  0xf0   :  { %v220_v39 = vpop.f32.mrf.mxu0  ;;  %1271 = vmatprep.subr.bf16.mxu1 %v1382_v3 }
  0xf1   :  { %v1538_v41 = vadd.f32 %v1042_v27, %v220_v39  ;;  %v267_v45 = vpack.c.bf16 %v1534_v38, %v1540_v42  ;;  %v1378_v39 = vld [vmem:[%s1862_s1 + $0x28] sm:$0xff]  }
  0xf2   :  { %v1199_v43 = vpop.f32.mrf.mxu0 }
  0xf3   :  { %v266_v44 = vpack.c.bf16 %v1538_v41, %v1536_v40  ;;  %v1552_v52 = vadd.f32 %v1199_v43, %v1042_v27  ;;  %1272 = vmatpush3.bf16.msra.mxu1 %v1382_v3  ;;  %v1379_v43 = vld [vmem:[%s1862_s1 + $0x30] sm:$0xff]  }
  0xf4   :  { %v233_v46 = vpop.f32.mrf.mxu0  ;;  %1273 = vmatprep.subr.bf16.mxu1 %v1383_v4 }
  0xf5   :  { %1225 = vmatprep.mubr.bf16.mxu1 %v266_v44  ;;  %v1548_v50 = vadd.f32 %v1042_v27, %v233_v46  ;;  %v1380_v44 = vld [vmem:[%s1862_s1 + $0x38] sm:$0xff]   ;;  %v1386_v46 = vld [vmem:[%s1863_s6 + $0x10] sm:$0xff]  }
  0xf6   :  { %v1200_v47 = vpop.f32.mrf.mxu0  ;;  %1226 = vmatmul.mubr.bf16.gmra.mxu1 %v267_v45  ;;  %v1385_v45 = vld [vmem:[%s1863_s6 + $0x18] sm:$0xff]  }
  0xf7   :  { %v1546_v48 = vadd.f32 %v1200_v47, %v1042_v27  ;;  %1274 = vmatpush3.bf16.msra.mxu1 %v1383_v4  ;;  %v1387_v47 = vld [vmem:[%s1863_s6 + $0x8] sm:$0xff]  }
  0xf8   :  { %v236_v49 = vpop.f32.mrf.mxu0  ;;  %1275 = vmatprep.subr.bf16.mxu1 %v1384_v5 }
  0xf9   :  { %v1550_v51 = vadd.f32 %v1042_v27, %v236_v49  ;;  %v269_v55 = vpack.c.bf16 %v1546_v48, %v1552_v52  ;;  %v1388_v49 = vld [vmem:[%s1863_s6] sm:$0xff]  }
  0xfa   :  { %v1203_v53 = vpop.f32.mrf.mxu0 }
  0xfb   :  { %v268_v54 = vpack.c.bf16 %v1550_v51, %v1548_v50  ;;  %v1564_v62 = vadd.f32 %v1203_v53, %v1042_v27  ;;  %1276 = vmatpush3.bf16.msra.mxu1 %v1384_v5  ;;  %v1621_v53 = vld [vmem:[%s1864_s5] ss:$0 sm:$0xff] }
  0xfc   :  { %v249_v56 = vpop.f32.mrf.mxu0  ;;  %1277 = vmatprep.subr.bf16.mxu1 %v1385_v45 }
  0xfd   :  { %1229 = vmatprep.mubr.bf16.mxu1 %v268_v54  ;;  %v1560_v60 = vadd.f32 %v1042_v27, %v249_v56 }
  0xfe   :  { %v1204_v57 = vpop.f32.mrf.mxu0  ;;  %1230 = vmatmul.mubr.bf16.gmra.mxu1 %v269_v55 }
  0xff   :  { %v1558_v58 = vadd.f32 %v1204_v57, %v1042_v27  ;;  %1278 = vmatpush3.bf16.msra.mxu1 %v1385_v45 }
 0x100   :  { %v252_v59 = vpop.f32.mrf.mxu0  ;;  %1279 = vmatprep.subr.bf16.mxu1 %v1386_v46 }
 0x101   :  { %v1562_v61 = vadd.f32 %v1042_v27, %v252_v59  ;;  %v271_v0 = vpack.c.bf16 %v1558_v58, %v1564_v62 }
 0x103   :  { %v270_v63 = vpack.c.bf16 %v1562_v61, %v1560_v60  ;;  %1280 = vmatpush3.bf16.msra.mxu1 %v1386_v46 }
 0x104   :  { %1281 = vmatprep.subr.bf16.mxu1 %v1387_v47 }
 0x105   :  { %1233 = vmatprep.mubr.bf16.mxu1 %v270_v63 }
 0x106   :  { %1234 = vmatmul.mubr.bf16.gmra.mxu1 %v271_v0 }
 0x107   :  { %1282 = vmatpush3.bf16.msra.mxu1 %v1387_v47 }
 0x108   :  { %1283 = vmatprep.subr.bf16.mxu1 %v1388_v49 }
 0x10b   :  { %1284 = vmatpush3.bf16.msra.mxu1 %v1388_v49 }
 0x1ae   :  { %v1223_v6 = vpop.f32.mrf.mxu1 }
 0x1b0   :  { %v370_v7 = vpop.f32.mrf.mxu1 }
 0x1b2   :  { %v1224_v8 = vpop.f32.mrf.mxu1 }
 0x1b3   :  { %v450_v29 = vpack.c.bf16 %v1224_v8, %v1223_v6 }
 0x1b4   :  { %v373_v9 = vpop.f32.mrf.mxu1 }
 0x1b5   :  { %v449_v33 = vpack.c.bf16 %v373_v9, %v370_v7 }
 0x1b6   :  { %v1227_v10 = vpop.f32.mrf.mxu1 }
 0x1b8   :  { %v386_v11 = vpop.f32.mrf.mxu1 }
 0x1ba   :  { %v1228_v12 = vpop.f32.mrf.mxu1 }
 0x1bb   :  { %v452_v26 = vpack.c.bf16 %v1228_v12, %v1227_v10 }
 0x1bc   :  { %v389_v13 = vpop.f32.mrf.mxu1 }
 0x1bd   :  { %v451_v27 = vpack.c.bf16 %v389_v13, %v386_v11 }
 0x1be   :  { %v1231_v14 = vpop.f32.mrf.mxu1 }
 0x1c0   :  { %v402_v15 = vpop.f32.mrf.mxu1 }
 0x1c2   :  { %v1232_v16 = vpop.f32.mrf.mxu1 }
 0x1c3   :  { %v454_v24 = vpack.c.bf16 %v1232_v16, %v1231_v14 }
 0x1c4   :  { %v405_v17 = vpop.f32.mrf.mxu1 }
 0x1c5   :  { %v453_v25 = vpack.c.bf16 %v405_v17, %v402_v15 }
 0x1c6   :  { %v1235_v18 = vpop.f32.mrf.mxu1 }
 0x1c8   :  { %v418_v19 = vpop.f32.mrf.mxu1 }
 0x1ca   :  { %v1236_v20 = vpop.f32.mrf.mxu1 }
 0x1cb   :  { %v456_v21 = vpack.c.bf16 %v1236_v20, %v1235_v18 }
 0x1cc   :  { %v421_v22 = vpop.f32.mrf.mxu1 }
 0x1cd   :  { %v455_v23 = vpack.c.bf16 %v421_v22, %v418_v19  ;;  %1237 = vmatprep.subr.bf16.mxu0 %v456_v21 }
 0x1ce   :  { %1238 = vmatpush3.bf16.msra.mxu0 %v456_v21 }
 0x1cf   :  { %1239 = vmatprep.subr.bf16.mxu0 %v455_v23 }
 0x1d2   :  { %1240 = vmatpush3.bf16.msra.mxu0 %v455_v23 }
 0x1d3   :  { %1241 = vmatprep.subr.bf16.mxu0 %v454_v24 }
 0x1d6   :  { %1242 = vmatpush3.bf16.msra.mxu0 %v454_v24 }
 0x1d7   :  { %1243 = vmatprep.subr.bf16.mxu0 %v453_v25 }
 0x1da   :  { %1244 = vmatpush3.bf16.msra.mxu0 %v453_v25 }
 0x1db   :  { %1245 = vmatprep.subr.bf16.mxu0 %v452_v26 }
 0x1de   :  { %1246 = vmatpush3.bf16.msra.mxu0 %v452_v26 }
 0x1df   :  { %1247 = vmatprep.subr.bf16.mxu0 %v451_v27 }
 0x1e2   :  { %1248 = vmatpush3.bf16.msra.mxu0 %v451_v27 }
 0x1e3   :  { %1249 = vmatprep.subr.bf16.mxu0 %v450_v29 }
 0x1e6   :  { %1250 = vmatpush3.bf16.msra.mxu0 %v450_v29 }
 0x1e7   :  { %1251 = vmatprep.subr.bf16.mxu0 %v449_v33 }
 0x1ea   :  { %1252 = vmatpush3.bf16.msra.mxu0 %v449_v33 }
 0x1ed   :  { %1254 = vmatmul.mubr.bf16.vlgmr.msra.gmra.mxu0 %v1374_v34 }
 0x1ee   :  { %1257 = vmatprep.mubr.bf16.mxu0 %v1375_v35 }
 0x1f5   :  { %1258 = vmatmul.mubr.bf16.gmra.mxu0 %v1376_v36 }
 0x1f6   :  { %1261 = vmatprep.mubr.bf16.mxu0 %v1377_v37 }
 0x1fd   :  { %1262 = vmatmul.mubr.bf16.gmra.mxu0 %v1378_v39 }
 0x1fe   :  { %1265 = vmatprep.mubr.bf16.mxu0 %v1379_v43 }
 0x205   :  { %1266 = vmatmul.mubr.bf16.gmra.mxu0 %v1380_v44 }
 0x2ad   :  { %v1255_v54 = vpop.f32.mrf.mxu0 }
 0x2ae   :  { %v555_v55 = vadd.f32 %v1255_v54, %v1621_v53 }
 0x2af   :  { %v546_v56 = vpop.f32.mrf.mxu0 }
 0x2b0   :  { %v611_v57 = vmax.f32 %v555_v55, 0.0  ;;  %v547_v59 = vadd.f32 %v1621_v53, %v546_v56 }
 0x2b1   :  { %v1256_v63 = vpop.f32.mrf.mxu0 }
 0x2b2   :  { %v1626_v0 = vadd.f32 %v611_v57, %v1528_v32  ;;  %v609_v1 = vmax.f32 %v547_v59, 0.0  ;;  %v558_v2 = vadd.f32 %v1256_v63, %v1621_v53 }
 0x2b3   :  { %v549_v3 = vpop.f32.mrf.mxu0 }
 0x2b4   :  { %643 = vst [vmem:[%s1865_s8 + $0x10] sm:$0xff] %v1626_v0  ;;  %v1634_v4 = vadd.f32 %v609_v1, %v1524_v30  ;;  %v612_v5 = vmax.f32 %v558_v2, 0.0  ;;  %v550_v6 = vadd.f32 %v1621_v53, %v549_v3 }
 0x2b5   :  { %v1259_v7 = vpop.f32.mrf.mxu0 }
 0x2b6   :  { %641 = vst [vmem:[%s1865_s8] sm:$0xff] %v1634_v4  ;;  %v1642_v32 = vadd.f32 %v612_v5, %v1522_v28  ;;  %v610_v8 = vmax.f32 %v550_v6, 0.0  ;;  %v571_v9 = vadd.f32 %v1259_v7, %v1621_v53  ;;  %v1389_v5 = vld [vmem:[%s1862_s1] sm:$0xff]  }
 0x2b7   :  { %v562_v10 = vpop.f32.mrf.mxu0  ;;  %1317 = vmatprep.mubr.bf16.mxu0 %v1389_v5 }
 0x2b8   :  { %644 = vst [vmem:[%s1865_s8 + $0x18] sm:$0xff] %v1642_v32  ;;  %v1650_v30 = vadd.f32 %v610_v8, %v1526_v31  ;;  %v615_v11 = vmax.f32 %v571_v9, 0.0  ;;  %v563_v12 = vadd.f32 %v1621_v53, %v562_v10  ;;  %v658_v31 = vpack.c.bf16 %v1642_v32, %v1626_v0 }
 0x2b9   :  { %v1260_v13 = vpop.f32.mrf.mxu0 }
 0x2ba   :  { %642 = vst [vmem:[%s1865_s8 + $0x8] sm:$0xff] %v1650_v30  ;;  %v1658_v28 = vadd.f32 %v615_v11, %v1540_v42  ;;  %v613_v14 = vmax.f32 %v563_v12, 0.0  ;;  %v574_v15 = vadd.f32 %v1260_v13, %v1621_v53  ;;  %v657_v16 = vpack.c.bf16 %v1650_v30, %v1634_v4 }
 0x2bb   :  { %v565_v17 = vpop.f32.mrf.mxu0 }
 0x2bc   :  { %647 = vst [vmem:[%s1865_s8 + $0x30] sm:$0xff] %v1658_v28  ;;  %v1670_v18 = vadd.f32 %v613_v14, %v1536_v40  ;;  %v616_v42 = vmax.f32 %v574_v15, 0.0  ;;  %v566_v19 = vadd.f32 %v1621_v53, %v565_v17  ;;  %1285 = vmatprep.mubr.bf16.mxu1 %v657_v16 }
 0x2bd   :  { %v1263_v20 = vpop.f32.mrf.mxu0  ;;  %1286 = vmatmul.mubr.bf16.vlgmr.msra.gmra.mxu1 %v658_v31 }
 0x2be   :  { %645 = vst [vmem:[%s1865_s8 + $0x20] sm:$0xff] %v1670_v18  ;;  %v1678_v21 = vadd.f32 %v616_v42, %v1534_v38  ;;  %v614_v22 = vmax.f32 %v566_v19, 0.0  ;;  %v587_v23 = vadd.f32 %v1263_v20, %v1621_v53 }
 0x2bf   :  { %v578_v24 = vpop.f32.mrf.mxu0 }
 0x2c0   :  { %648 = vst [vmem:[%s1865_s8 + $0x38] sm:$0xff] %v1678_v21  ;;  %v1686_v40 = vadd.f32 %v614_v22, %v1538_v41  ;;  %v619_v25 = vmax.f32 %v587_v23, 0.0  ;;  %v579_v26 = vadd.f32 %v1621_v53, %v578_v24  ;;  %v660_v35 = vpack.c.bf16 %v1678_v21, %v1658_v28 }
 0x2c1   :  { %v1264_v27 = vpop.f32.mrf.mxu0 }
 0x2c2   :  { %646 = vst [vmem:[%s1865_s8 + $0x28] sm:$0xff] %v1686_v40  ;;  %v1694_v38 = vadd.f32 %v619_v25, %v1552_v52  ;;  %v617_v29 = vmax.f32 %v579_v26, 0.0  ;;  %v590_v33 = vadd.f32 %v1264_v27, %v1621_v53  ;;  %v659_v34 = vpack.c.bf16 %v1686_v40, %v1670_v18 }
 0x2c3   :  { %v581_v41 = vpop.f32.mrf.mxu0 }
 0x2c4   :  { %651 = vst [vmem:[%s1865_s8 + $0x50] sm:$0xff] %v1694_v38  ;;  %v1706_v36 = vadd.f32 %v617_v29, %v1548_v50  ;;  %v620_v52 = vmax.f32 %v590_v33, 0.0  ;;  %v582_v37 = vadd.f32 %v1621_v53, %v581_v41  ;;  %1289 = vmatprep.mubr.bf16.mxu1 %v659_v34  ;;  %v1391_v34 = vld [vmem:[%s1862_s1 + $0x8] sm:$0xff]  }
 0x2c5   :  { %v1267_v39 = vpop.f32.mrf.mxu0  ;;  %1290 = vmatmul.mubr.bf16.gmra.mxu1 %v660_v35  ;;  %v1392_v41 = vld [vmem:[%s1862_s1 + $0x28] sm:$0xff]   ;;  %v1393_v35 = vld [vmem:[%s1862_s1 + $0x10] sm:$0xff]  }
 0x2c6   :  { %649 = vst [vmem:[%s1865_s8 + $0x40] sm:$0xff] %v1706_v36  ;;  %v1714_v43 = vadd.f32 %v620_v52, %v1546_v48  ;;  %v618_v44 = vmax.f32 %v582_v37, 0.0  ;;  %v603_v45 = vadd.f32 %v1267_v39, %v1621_v53  ;;  %v1394_v52 = vld [vmem:[%s1862_s1 + $0x30] sm:$0xff]   ;;  %v1395_v37 = vld [vmem:[%s1862_s1 + $0x18] sm:$0xff]  }
 0x2c7   :  { %v594_v46 = vpop.f32.mrf.mxu0  ;;  %v1396_v39 = vld [vmem:[%s1862_s1 + $0x38] sm:$0xff]  }
 0x2c8   :  { %652 = vst [vmem:[%s1865_s8 + $0x58] sm:$0xff] %v1714_v43  ;;  %v1722_v50 = vadd.f32 %v618_v44, %v1550_v51  ;;  %v623_v47 = vmax.f32 %v603_v45, 0.0  ;;  %v595_v49 = vadd.f32 %v1621_v53, %v594_v46  ;;  %v662_v59 = vpack.c.bf16 %v1714_v43, %v1694_v38  ;;  %v1084_v44 = vld [vmem:[%s1866_s7] ss:$0 sm:$0xff] }
 0x2c9   :  { %v1268_v54 = vpop.f32.mrf.mxu0 }
 0x2ca   :  { %650 = vst [vmem:[%s1865_s8 + $0x48] sm:$0xff] %v1722_v50  ;;  %v1730_v48 = vadd.f32 %v623_v47, %v1564_v62  ;;  %v621_v55 = vmax.f32 %v595_v49, 0.0  ;;  %v606_v56 = vadd.f32 %v1268_v54, %v1621_v53  ;;  %v661_v57 = vpack.c.bf16 %v1722_v50, %v1706_v36 }
 0x2cb   :  { %v597_v51 = vpop.f32.mrf.mxu0 }
 0x2cc   :  { %655 = vst [vmem:[%s1865_s8 + $0x70] sm:$0xff] %v1730_v48  ;;  %v1742_v63 = vadd.f32 %v621_v55, %v1560_v60  ;;  %v624_v62 = vmax.f32 %v606_v56, 0.0  ;;  %v598_v1 = vadd.f32 %v1621_v53, %v597_v51  ;;  %1293 = vmatprep.mubr.bf16.mxu1 %v661_v57 }
 0x2cd   :  { %1294 = vmatmul.mubr.bf16.gmra.mxu1 %v662_v59 }
 0x2ce   :  { %653 = vst [vmem:[%s1865_s8 + $0x60] sm:$0xff] %v1742_v63  ;;  %v1750_v2 = vadd.f32 %v624_v62, %v1558_v58  ;;  %v622_v3 = vmax.f32 %v598_v1, 0.0 }
 0x2d0   :  { %656 = vst [vmem:[%s1865_s8 + $0x78] sm:$0xff] %v1750_v2  ;;  %v1757_v60 = vadd.f32 %v622_v3, %v1562_v61  ;;  %v664_v58 = vpack.c.bf16 %v1750_v2, %v1730_v48  ;;  %v1390_v61 = vld [vmem:[%s1862_s1 + $0x20] sm:$0xff]  }
 0x2d2   :  { %654 = vst [vmem:[%s1865_s8 + $0x68] sm:$0xff] %v1757_v60  ;;  %v663_v53 = vpack.c.bf16 %v1757_v60, %v1742_v63 }
 0x2d4   :  { %1297 = vmatprep.mubr.bf16.mxu1 %v663_v53 }
 0x2d5   :  { %1298 = vmatmul.mubr.bf16.gmra.mxu1 %v664_v58 }
 0x2d6   :  { %1325 = vmatprep.mubr.bf16.mxu1 %v1390_v61 }
 0x37d   :  { %v1287_v6 = vpop.f32.mrf.mxu1 }
 0x37f   :  { %v763_v7 = vpop.f32.mrf.mxu1 }
 0x381   :  { %v1288_v8 = vpop.f32.mrf.mxu1 }
 0x382   :  { %v843_v29 = vpack.c.bf16 %v1288_v8, %v1287_v6 }
 0x383   :  { %v766_v9 = vpop.f32.mrf.mxu1 }
 0x384   :  { %v842_v33 = vpack.c.bf16 %v766_v9, %v763_v7 }
 0x385   :  { %v1291_v10 = vpop.f32.mrf.mxu1 }
 0x387   :  { %v779_v11 = vpop.f32.mrf.mxu1 }
 0x389   :  { %v1292_v12 = vpop.f32.mrf.mxu1 }
 0x38a   :  { %v845_v26 = vpack.c.bf16 %v1292_v12, %v1291_v10 }
 0x38b   :  { %v782_v13 = vpop.f32.mrf.mxu1 }
 0x38c   :  { %v844_v27 = vpack.c.bf16 %v782_v13, %v779_v11 }
 0x38d   :  { %v1295_v14 = vpop.f32.mrf.mxu1 }
 0x38f   :  { %v795_v15 = vpop.f32.mrf.mxu1 }
 0x391   :  { %v1296_v16 = vpop.f32.mrf.mxu1 }
 0x392   :  { %v847_v24 = vpack.c.bf16 %v1296_v16, %v1295_v14 }
 0x393   :  { %v798_v31 = vpop.f32.mrf.mxu1 }
 0x394   :  { %v846_v25 = vpack.c.bf16 %v798_v31, %v795_v15 }
 0x395   :  { %v1299_v17 = vpop.f32.mrf.mxu1 }
 0x397   :  { %v811_v42 = vpop.f32.mrf.mxu1 }
 0x399   :  { %v1300_v19 = vpop.f32.mrf.mxu1 }
 0x39a   :  { %v849_v20 = vpack.c.bf16 %v1300_v19, %v1299_v17 }
 0x39b   :  { %v814_v22 = vpop.f32.mrf.mxu1 }
 0x39c   :  { %v848_v23 = vpack.c.bf16 %v814_v22, %v811_v42  ;;  %1301 = vmatprep.subr.bf16.mxu0 %v849_v20  ;;  %1333 = vmatprep.subr.bf16.mxu1 %v849_v20 }
 0x39d   :  { %1302 = vmatpush3.bf16.msra.mxu0 %v849_v20  ;;  %1341 = vmatpush3.bf16.msra.mxu1 %v849_v20 }
 0x39e   :  { %1303 = vmatprep.subr.bf16.mxu0 %v848_v23  ;;  %1334 = vmatprep.subr.bf16.mxu1 %v848_v23 }
 0x3a1   :  { %1304 = vmatpush3.bf16.msra.mxu0 %v848_v23  ;;  %1342 = vmatpush3.bf16.msra.mxu1 %v848_v23 }
 0x3a2   :  { %1305 = vmatprep.subr.bf16.mxu0 %v847_v24  ;;  %1335 = vmatprep.subr.bf16.mxu1 %v847_v24 }
 0x3a5   :  { %1306 = vmatpush3.bf16.msra.mxu0 %v847_v24  ;;  %1343 = vmatpush3.bf16.msra.mxu1 %v847_v24 }
 0x3a6   :  { %1307 = vmatprep.subr.bf16.mxu0 %v846_v25  ;;  %1336 = vmatprep.subr.bf16.mxu1 %v846_v25 }
 0x3a9   :  { %1308 = vmatpush3.bf16.msra.mxu0 %v846_v25  ;;  %1344 = vmatpush3.bf16.msra.mxu1 %v846_v25 }
 0x3aa   :  { %1309 = vmatprep.subr.bf16.mxu0 %v845_v26  ;;  %1337 = vmatprep.subr.bf16.mxu1 %v845_v26 }
 0x3ad   :  { %1310 = vmatpush3.bf16.msra.mxu0 %v845_v26  ;;  %1345 = vmatpush3.bf16.msra.mxu1 %v845_v26 }
 0x3ae   :  { %1311 = vmatprep.subr.bf16.mxu0 %v844_v27  ;;  %1338 = vmatprep.subr.bf16.mxu1 %v844_v27 }
 0x3b1   :  { %1312 = vmatpush3.bf16.msra.mxu0 %v844_v27  ;;  %1346 = vmatpush3.bf16.msra.mxu1 %v844_v27 }
 0x3b2   :  { %1313 = vmatprep.subr.bf16.mxu0 %v843_v29  ;;  %1339 = vmatprep.subr.bf16.mxu1 %v843_v29 }
 0x3b5   :  { %1314 = vmatpush3.bf16.msra.mxu0 %v843_v29  ;;  %1347 = vmatpush3.bf16.msra.mxu1 %v843_v29 }
 0x3b6   :  { %1315 = vmatprep.subr.bf16.mxu0 %v842_v33  ;;  %1340 = vmatprep.subr.bf16.mxu1 %v842_v33 }
 0x3b9   :  { %1316 = vmatpush3.bf16.msra.mxu0 %v842_v33  ;;  %1348 = vmatpush3.bf16.msra.mxu1 %v842_v33 }
 0x3bc   :  { %1318 = vmatmul.mubr.bf16.vlgmr.msra.gmra.mxu0 %v1391_v34  ;;  %1326 = vmatmul.mubr.bf16.vlgmr.msra.gmra.mxu1 %v1392_v41 }
 0x3bd   :  { %1321 = vmatprep.mubr.bf16.mxu0 %v1393_v35  ;;  %1329 = vmatprep.mubr.bf16.mxu1 %v1394_v52 }
 0x3c4   :  { %1322 = vmatmul.mubr.bf16.gmra.mxu0 %v1395_v37  ;;  %1330 = vmatmul.mubr.bf16.gmra.mxu1 %v1396_v39 }
 0x47c   :  { %v1319_v45 = vpop.f32.mrf.mxu0  ;;  %v1327_v46 = vpop.f32.mrf.mxu1 }
 0x47d   :  { %v948_v47 = vadd.f32 %v1319_v45, %v1084_v44  ;;  %v980_v49 = vadd.f32 %v1327_v46, %v1084_v44 }
 0x47e   :  { %v939_v54 = vpop.f32.mrf.mxu0  ;;  %v971_v55 = vpop.f32.mrf.mxu1 }
 0x47f   :  { %v1004_v56 = vadd.f32 %v948_v47, %v1626_v0  ;;  %v1012_v57 = vadd.f32 %v980_v49, %v1694_v38  ;;  %v940_v51 = vadd.f32 %v1084_v44, %v939_v54  ;;  %v972_v59 = vadd.f32 %v1084_v44, %v971_v55 }
 0x480   :  { %v1320_v62 = vpop.f32.mrf.mxu0  ;;  %v1328_v1 = vpop.f32.mrf.mxu1 }
 0x481   :  { %1020 = vst [vmem:[%s1867_s9 + $0x10] sm:$0xff] %v1004_v56  ;;  %1028 = vst [vmem:[%s1867_s9 + $0x50] sm:$0xff] %v1012_v57  ;;  %v1002_v3 = vadd.f32 %v940_v51, %v1634_v4  ;;  %v1010_v53 = vadd.f32 %v972_v59, %v1706_v36  ;;  %v951_v58 = vadd.f32 %v1320_v62, %v1084_v44 }
 0x482   :  { %v983_v0 = vadd.f32 %v1328_v1, %v1084_v44  ;;  %v942_v5 = vpop.f32.mrf.mxu0  ;;  %v974_v38 = vpop.f32.mrf.mxu1 }
 0x483   :  { %1018 = vst [vmem:[%s1867_s9] sm:$0xff] %v1002_v3  ;;  %1026 = vst [vmem:[%s1867_s9 + $0x40] sm:$0xff] %v1010_v53  ;;  %v1005_v61 = vadd.f32 %v951_v58, %v1642_v32  ;;  %v943_v7 = vadd.f32 %v1084_v44, %v942_v5  ;;  %v975_v4 = vadd.f32 %v1084_v44, %v974_v38 }
 0x484   :  { %v1013_v6 = vadd.f32 %v983_v0, %v1714_v43  ;;  %v1323_v8 = vpop.f32.mrf.mxu0  ;;  %v1331_v36 = vpop.f32.mrf.mxu1 }
 0x485   :  { %1021 = vst [vmem:[%s1867_s9 + $0x18] sm:$0xff] %v1005_v61  ;;  %v1003_v9 = vadd.f32 %v943_v7, %v1650_v30  ;;  %v1011_v10 = vadd.f32 %v975_v4, %v1722_v50  ;;  %v964_v11 = vadd.f32 %v1323_v8, %v1084_v44  ;;  %v996_v32 = vadd.f32 %v1331_v36, %v1084_v44 }
 0x486   :  { %1029 = vst [vmem:[%s1867_s9 + $0x58] sm:$0xff] %v1013_v6  ;;  %v955_v12 = vpop.f32.mrf.mxu0  ;;  %v987_v43 = vpop.f32.mrf.mxu1 }
 0x487   :  { %1019 = vst [vmem:[%s1867_s9 + $0x8] sm:$0xff] %v1003_v9  ;;  %1027 = vst [vmem:[%s1867_s9 + $0x48] sm:$0xff] %v1011_v10  ;;  %v1008_v13 = vadd.f32 %v964_v11, %v1658_v28  ;;  %v1016_v14 = vadd.f32 %v996_v32, %v1730_v48  ;;  %v956_v15 = vadd.f32 %v1084_v44, %v955_v12 }
 0x488   :  { %v988_v30 = vadd.f32 %v1084_v44, %v987_v43  ;;  %v1324_v16 = vpop.f32.mrf.mxu0  ;;  %v1332_v50 = vpop.f32.mrf.mxu1 }
 0x489   :  { %1024 = vst [vmem:[%s1867_s9 + $0x30] sm:$0xff] %v1008_v13  ;;  %1032 = vst [vmem:[%s1867_s9 + $0x70] sm:$0xff] %v1016_v14  ;;  %v1006_v31 = vadd.f32 %v956_v15, %v1670_v18  ;;  %v967_v42 = vadd.f32 %v1324_v16, %v1084_v44  ;;  %v999_v28 = vadd.f32 %v1332_v50, %v1084_v44 }
 0x48a   :  { %v1014_v17 = vadd.f32 %v988_v30, %v1742_v63  ;;  %v958_v19 = vpop.f32.mrf.mxu0  ;;  %v990_v48 = vpop.f32.mrf.mxu1 }
 0x48b   :  { %1022 = vst [vmem:[%s1867_s9 + $0x20] sm:$0xff] %v1006_v31  ;;  %v1009_v20 = vadd.f32 %v967_v42, %v1678_v21  ;;  %v1017_v22 = vadd.f32 %v999_v28, %v1750_v2  ;;  %v959_v23 = vadd.f32 %v1084_v44, %v958_v19  ;;  %v991_v18 = vadd.f32 %v1084_v44, %v990_v48 }
 0x48c   :  { %1030 = vst [vmem:[%s1867_s9 + $0x60] sm:$0xff] %v1014_v17 }
 0x48d   :  { %1025 = vst [vmem:[%s1867_s9 + $0x38] sm:$0xff] %v1009_v20  ;;  %1033 = vst [vmem:[%s1867_s9 + $0x78] sm:$0xff] %v1017_v22  ;;  %v1007_v63 = vadd.f32 %v959_v23, %v1686_v40  ;;  %v1015_v24 = vadd.f32 %v991_v18, %v1757_v60 }
 0x48f   :  { %1023 = vst [vmem:[%s1867_s9 + $0x28] sm:$0xff] %v1007_v63  ;;  %1031 = vst [vmem:[%s1867_s9 + $0x68] sm:$0xff] %v1015_v24 }

</bundles_post_ra>
